<compile_context>
chip_gen: v7x
topology: tpu7x:2x2x1
jax: 0.10.0
libtpu: 0.0.40
codegen_flags: <defaults>
</compile_context>

<pallas_src>
import functools

import jax
import jax.numpy as jnp
from jax import lax
from jax.experimental import pallas as pl
from jax.experimental.pallas import tpu as pltpu


def _as_bf16(v):
    return v if v.dtype == jnp.bfloat16 else v.astype(jnp.bfloat16)


def _encoder_kernel(x_ref, w1_ref, b1_ref, w2_ref, b2_ref, w3_ref, b3_ref, o_ref):
    # x tile: (tb, input_dim). Supplied as bf16 by the producer (no in-kernel
    # cast, no extra HBM bytes); falls back to a trace-time cast otherwise.
    x = _as_bf16(x_ref[...])

    h1 = jnp.dot(x, _as_bf16(w1_ref[...]),
                 preferred_element_type=jnp.float32) + b1_ref[...]
    h1 = jnp.maximum(h1, 0.0)                                   # ReLU (f32, VPU)

    h2 = jnp.dot(_as_bf16(h1), _as_bf16(w2_ref[...]),
                 preferred_element_type=jnp.float32) + b2_ref[...]
    h2 = jnp.maximum(h2, 0.0)                                   # ReLU

    y = jnp.dot(_as_bf16(h2), _as_bf16(w3_ref[...]),
                preferred_element_type=jnp.float32) + b3_ref[...]

    # F.normalize(y, p=2, dim=1): y / max(||y||, 1e-12) == y * rsqrt(max(ss, 1e-24))
    sumsq = jnp.sum(y * y, axis=1, keepdims=True)
    inv = lax.rsqrt(jnp.maximum(sumsq, 1e-24))                  # EUP, free slot
    o_ref[...] = (y * inv).astype(o_ref.dtype)


def _round_up(n: int, m: int) -> int:
    return ((n + m - 1) // m) * m


def prepare_params(w1, b1, w2, b2, w3, b3):
    """One-time (caller-side) prep: bf16 weights for the MXU's native bf16 path
    (halves weight HBM bytes), f32 biases shaped (1, out)."""
    return (
        w1.astype(jnp.bfloat16), jnp.asarray(b1, jnp.float32).reshape(1, -1),
        w2.astype(jnp.bfloat16), jnp.asarray(b2, jnp.float32).reshape(1, -1),
        w3.astype(jnp.bfloat16), jnp.asarray(b3, jnp.float32).reshape(1, -1),
    )


def _vmem_limit_bytes() -> int:
    # 128 MiB physical on v5e/v6e, 64 MiB per-TC on v7x; leave headroom.
    try:
        phys = int(pltpu.get_tpu_info().vmem_capacity_bytes)
    except Exception:
        phys = 64 * 1024 * 1024
    return max(32 * 1024 * 1024, min(phys * 3 // 4, 96 * 1024 * 1024))


@functools.partial(jax.jit, static_argnames=("tb_max", "out_dtype"))
def simple_text_encoder(x, w1, b1, w2, b2, w3, b3, *, tb_max: int = 512,
                        out_dtype=jnp.float32):
    """x: (B, input_dim) f32 or bf16 -> (B, embedding_dim), L2-normalized rows.

    Weights are (in, out) bf16 (see prepare_params); biases are (1, out) f32.
    """
    batch, input_dim = x.shape
    hidden1 = w1.shape[1]
    hidden2 = w2.shape[1]
    emb_dim = w3.shape[1]

    # --- Batch rows: pad only to a multiple of 8 (sublane alignment; <=7 rows).
    b8 = _round_up(batch, 8)
    if b8 != batch:
        x = jnp.pad(x, ((0, b8 - batch), (0, 0)))

    # --- Tile selection.
    #   * >=2 grid steps when possible so v7x's two TCs both work and the
    #     x/out DMAs pipeline against compute.
    #   * cap tb by a VMEM budget derived from the actual chip's capacity.
    vmem_limit = _vmem_limit_bytes()

    weight_bytes = (
        2 * (input_dim * hidden1 + hidden1 * hidden2 + hidden2 * emb_dim)   # bf16 W
        + 4 * (hidden1 + hidden2 + emb_dim)                                 # f32 b
    )
    per_row_bytes = (
        2 * input_dim * x.dtype.itemsize                 # double-buffered x tile
        + 2 * emb_dim * jnp.dtype(out_dtype).itemsize    # double-buffered out tile
        + 4 * 4 * max(hidden1, hidden2)                  # activation temporaries
    )
    budget = int(vmem_limit * 0.85) - weight_bytes
    tb_cap = max(8, (budget // max(per_row_bytes, 1)) // 8 * 8)

    num_tiles = pl.cdiv(b8, tb_max)
    if num_tiles < 2 and b8 >= 16:
        num_tiles = 2
    tb = _round_up(pl.cdiv(b8, num_tiles), 8)
    tb = max(8, min(tb, b8, tb_cap))
    grid = (pl.cdiv(b8, tb),)

    flops = 2 * b8 * (input_dim * hidden1 + hidden1 * hidden2 + hidden2 * emb_dim)
    bytes_accessed = (
        weight_bytes
        + x.dtype.itemsize * b8 * input_dim
        + jnp.dtype(out_dtype).itemsize * b8 * emb_dim
    )
    cost = pl.CostEstimate(flops=flops, transcendentals=b8,
                           bytes_accessed=bytes_accessed)

    out = pl.pallas_call(
        _encoder_kernel,
        out_shape=jax.ShapeDtypeStruct((b8, emb_dim), out_dtype),
        grid=grid,
        in_specs=[
            pl.BlockSpec((tb, input_dim), lambda i: (i, 0)),      # x tile (pipelined)
            pl.BlockSpec((input_dim, hidden1), lambda i: (0, 0)), # w1 (VMEM-resident)
            pl.BlockSpec((1, hidden1), lambda i: (0, 0)),         # b1
            pl.BlockSpec((hidden1, hidden2), lambda i: (0, 0)),   # w2
            pl.BlockSpec((1, hidden2), lambda i: (0, 0)),         # b2
            pl.BlockSpec((hidden2, emb_dim), lambda i: (0, 0)),   # w3
            pl.BlockSpec((1, emb_dim), lambda i: (0, 0)),         # b3
        ],
        out_specs=pl.BlockSpec((tb, emb_dim), lambda i: (i, 0)),
        compiler_params=pltpu.CompilerParams(
            dimension_semantics=("parallel",),   # v7x: shard batch over both TCs
            vmem_limit_bytes=int(vmem_limit),
        ),
        cost_estimate=cost,
    )(x, w1, b1, w2, b2, w3, b3)

    return out[:batch]


def init_params(key, input_dim, embedding_dim=128, hidden=256):
    """Deterministic synthetic parameters (not a checkpoint load).
    Stored as (in, out) so the kernel does x @ W + b directly."""
    k1, k2, k3, k4, k5, k6 = jax.random.split(key, 6)
    scale1 = 1.0 / jnp.sqrt(input_dim)
    scale2 = 1.0 / jnp.sqrt(hidden)
    w1 = jax.random.uniform(k1, (input_dim, hidden), jnp.float32, -scale1, scale1)
    b1 = jax.random.uniform(k2, (1, hidden), jnp.float32, -scale1, scale1)
    w2 = jax.random.uniform(k3, (hidden, hidden), jnp.float32, -scale2, scale2)
    b2 = jax.random.uniform(k4, (1, hidden), jnp.float32, -scale2, scale2)
    w3 = jax.random.uniform(k5, (hidden, embedding_dim), jnp.float32, -scale2, scale2)
    b3 = jax.random.uniform(k6, (1, embedding_dim), jnp.float32, -scale2, scale2)
    return w1, b1, w2, b2, w3, b3


def reference_forward(x, w1, b1, w2, b2, w3, b3):
    h1 = jnp.maximum(x @ w1 + b1, 0.0)
    h2 = jnp.maximum(h1 @ w2 + b2, 0.0)
    y = h2 @ w3 + b3
    norm = jnp.sqrt(jnp.sum(y * y, axis=1, keepdims=True))
    return y / jnp.maximum(norm, 1e-12)


if __name__ == "__main__":
    batch, input_dim, embedding_dim = 8, 64, 128

    key = jax.random.PRNGKey(0)
    kx, kp = jax.random.split(key)
    x = jax.random.normal(kx, (batch, input_dim), dtype=jnp.float32)
    raw_params = init_params(kp, input_dim, embedding_dim)

    # Producer-side, one-time casts (hoisted out of the per-call hot path):
    params = prepare_params(*raw_params)         # bf16 weights, f32 biases
    x_bf16 = x.astype(jnp.bfloat16)              # halves the dominant x HBM stream

    out = jax.block_until_ready(simple_text_encoder(x_bf16, *params))

    ref = reference_forward(x, *raw_params)
    assert out.shape == (batch, embedding_dim), out.shape
    # bf16 x + bf16 weights inside the kernel -> loosened tolerance vs f32 reference.
    err = float(jnp.max(jnp.abs(out.astype(jnp.float32) - ref)))
    assert jnp.allclose(out.astype(jnp.float32), ref, atol=3e-2, rtol=3e-2), err

    print("KERNEL_OK")
</pallas_src>

<mosaic_0001>
module attributes {stable_mosaic.version = 11 : i64} {
  func.func @_encoder_kernel(%arg0: i32, %arg1: memref<8x64xbf16, #tpu.memory_space<vmem>>, %arg2: memref<64x256xbf16, #tpu.memory_space<vmem>>, %arg3: memref<1x256xf32, #tpu.memory_space<vmem>>, %arg4: memref<256x256xbf16, #tpu.memory_space<vmem>>, %arg5: memref<1x256xf32, #tpu.memory_space<vmem>>, %arg6: memref<256x128xbf16, #tpu.memory_space<vmem>>, %arg7: memref<1x128xf32, #tpu.memory_space<vmem>>, %arg8: memref<8x128xf32, #tpu.memory_space<vmem>>) attributes {dimension_semantics = [#tpu.dimension_semantics<parallel>], iteration_bounds = array<i64: 1>, scalar_prefetch = 0 : i64, scratch_operands = 0 : i64, tpu.core_type = #tpu.core_type<tc>, window_params = [{transform_indices = @transform_0, window_bounds = array<i64: 8, 64>}, {pipeline_mode = #tpu.pipeline_mode<synchronous>, transform_indices = @transform_1, window_bounds = array<i64: 64, 256>}, {pipeline_mode = #tpu.pipeline_mode<synchronous>, transform_indices = @transform_2, window_bounds = array<i64: 1, 256>}, {pipeline_mode = #tpu.pipeline_mode<synchronous>, transform_indices = @transform_3, window_bounds = array<i64: 256, 256>}, {pipeline_mode = #tpu.pipeline_mode<synchronous>, transform_indices = @transform_4, window_bounds = array<i64: 1, 256>}, {pipeline_mode = #tpu.pipeline_mode<synchronous>, transform_indices = @transform_5, window_bounds = array<i64: 256, 128>}, {pipeline_mode = #tpu.pipeline_mode<synchronous>, transform_indices = @transform_6, window_bounds = array<i64: 1, 128>}, {transform_indices = @transform_7, window_bounds = array<i64: 8, 128>}]} {
    %c0 = arith.constant 0 : index
    %c0_0 = arith.constant 0 : index
    %0 = vector.load %arg1[%c0, %c0_0] : memref<8x64xbf16, #tpu.memory_space<vmem>>, vector<8x64xbf16>
    %c0_1 = arith.constant 0 : index
    %c0_2 = arith.constant 0 : index
    %1 = vector.load %arg2[%c0_1, %c0_2] : memref<64x256xbf16, #tpu.memory_space<vmem>>, vector<64x256xbf16>
    %cst = arith.constant dense<0.000000e+00> : vector<8x256xf32>
    %2 = tpu.matmul %0, %1, %cst {dimension_numbers = #tpu.dot_dimension_numbers<[1], [0], [0], [1], [0, 0, 1, 1], [], []>} : vector<8x64xbf16>, vector<64x256xbf16>, vector<8x256xf32> -> vector<8x256xf32>
    %c0_3 = arith.constant 0 : index
    %c0_4 = arith.constant 0 : index
    %3 = vector.load %arg3[%c0_3, %c0_4] : memref<1x256xf32, #tpu.memory_space<vmem>>, vector<1x256xf32>
    %4 = vector.broadcast %3 : vector<1x256xf32> to vector<8x256xf32>
    %5 = arith.addf %2, %4 : vector<8x256xf32>
    %cst_5 = arith.constant 0.000000e+00 : f32
    %6 = vector.broadcast %cst_5 : f32 to vector<8x256xf32>
    %7 = arith.maximumf %5, %6 : vector<8x256xf32>
    %8 = arith.truncf %7 : vector<8x256xf32> to vector<8x256xbf16>
    %c0_6 = arith.constant 0 : index
    %c0_7 = arith.constant 0 : index
    %9 = vector.load %arg4[%c0_6, %c0_7] : memref<256x256xbf16, #tpu.memory_space<vmem>>, vector<256x256xbf16>
    %cst_8 = arith.constant dense<0.000000e+00> : vector<8x256xf32>
    %10 = tpu.matmul %8, %9, %cst_8 {dimension_numbers = #tpu.dot_dimension_numbers<[1], [0], [0], [1], [0, 0, 1, 1], [], []>} : vector<8x256xbf16>, vector<256x256xbf16>, vector<8x256xf32> -> vector<8x256xf32>
    %c0_9 = arith.constant 0 : index
    %c0_10 = arith.constant 0 : index
    %11 = vector.load %arg5[%c0_9, %c0_10] : memref<1x256xf32, #tpu.memory_space<vmem>>, vector<1x256xf32>
    %12 = vector.broadcast %11 : vector<1x256xf32> to vector<8x256xf32>
    %13 = arith.addf %10, %12 : vector<8x256xf32>
    %cst_11 = arith.constant 0.000000e+00 : f32
    %14 = vector.broadcast %cst_11 : f32 to vector<8x256xf32>
    %15 = arith.maximumf %13, %14 : vector<8x256xf32>
    %16 = arith.truncf %15 : vector<8x256xf32> to vector<8x256xbf16>
    %c0_12 = arith.constant 0 : index
    %c0_13 = arith.constant 0 : index
    %17 = vector.load %arg6[%c0_12, %c0_13] : memref<256x128xbf16, #tpu.memory_space<vmem>>, vector<256x128xbf16>
    %cst_14 = arith.constant dense<0.000000e+00> : vector<8x128xf32>
    %18 = tpu.matmul %16, %17, %cst_14 {dimension_numbers = #tpu.dot_dimension_numbers<[1], [0], [0], [1], [0, 0, 1, 1], [], []>} : vector<8x256xbf16>, vector<256x128xbf16>, vector<8x128xf32> -> vector<8x128xf32>
    %c0_15 = arith.constant 0 : index
    %c0_16 = arith.constant 0 : index
    %19 = vector.load %arg7[%c0_15, %c0_16] : memref<1x128xf32, #tpu.memory_space<vmem>>, vector<1x128xf32>
    %20 = vector.broadcast %19 : vector<1x128xf32> to vector<8x128xf32>
    %21 = arith.addf %18, %20 : vector<8x128xf32>
    %22 = arith.mulf %21, %21 : vector<8x128xf32>
    %cst_17 = arith.constant dense<0.000000e+00> : vector<8xf32>
    %23 = vector.multi_reduction <add>, %22, %cst_17 [1] : vector<8x128xf32> to vector<8xf32>
    %24 = vector.shape_cast %23 : vector<8xf32> to vector<8x1xf32>
    %cst_18 = arith.constant 1.000000e-24 : f32
    %25 = vector.broadcast %cst_18 : f32 to vector<8x1xf32>
    %26 = arith.maximumf %24, %25 : vector<8x1xf32>
    %27 = math.rsqrt %26 : vector<8x1xf32>
    %28 = vector.broadcast %27 : vector<8x1xf32> to vector<8x128xf32>
    %29 = arith.mulf %21, %28 : vector<8x128xf32>
    %c0_19 = arith.constant 0 : index
    %c0_20 = arith.constant 0 : index
    %30 = vector.load %arg8[%c0_19, %c0_20] : memref<8x128xf32, #tpu.memory_space<vmem>>, vector<8x128xf32>
    tpu.vector_store %arg8[%c0_19, %c0_20], %29 {strides = array<i32>} : memref<8x128xf32, #tpu.memory_space<vmem>>, vector<8x128xf32>,
    return
  }
  func.func @transform_0(%arg0: i32) -> (i32, i32) {
    %c0_i32 = arith.constant 0 : i32
    %c0_i32_0 = arith.constant 0 : i32
    return %arg0, %c0_i32 : i32, i32
  }
  func.func @transform_1(%arg0: i32) -> (i32, i32) {
    %c0_i32 = arith.constant 0 : i32
    %c0_i32_0 = arith.constant 0 : i32
    %c0_i32_1 = arith.constant 0 : i32
    return %c0_i32, %c0_i32_0 : i32, i32
  }
  func.func @transform_2(%arg0: i32) -> (i32, i32) {
    %c0_i32 = arith.constant 0 : i32
    %c0_i32_0 = arith.constant 0 : i32
    %c0_i32_1 = arith.constant 0 : i32
    return %c0_i32, %c0_i32_0 : i32, i32
  }
  func.func @transform_3(%arg0: i32) -> (i32, i32) {
    %c0_i32 = arith.constant 0 : i32
    %c0_i32_0 = arith.constant 0 : i32
    %c0_i32_1 = arith.constant 0 : i32
    return %c0_i32, %c0_i32_0 : i32, i32
  }
  func.func @transform_4(%arg0: i32) -> (i32, i32) {
    %c0_i32 = arith.constant 0 : i32
    %c0_i32_0 = arith.constant 0 : i32
    %c0_i32_1 = arith.constant 0 : i32
    return %c0_i32, %c0_i32_0 : i32, i32
  }
  func.func @transform_5(%arg0: i32) -> (i32, i32) {
    %c0_i32 = arith.constant 0 : i32
    %c0_i32_0 = arith.constant 0 : i32
    %c0_i32_1 = arith.constant 0 : i32
    return %c0_i32, %c0_i32_0 : i32, i32
  }
  func.func @transform_6(%arg0: i32) -> (i32, i32) {
    %c0_i32 = arith.constant 0 : i32
    %c0_i32_0 = arith.constant 0 : i32
    %c0_i32_1 = arith.constant 0 : i32
    return %c0_i32, %c0_i32_0 : i32, i32
  }
  func.func @transform_7(%arg0: i32) -> (i32, i32) {
    %c0_i32 = arith.constant 0 : i32
    %c0_i32_0 = arith.constant 0 : i32
    return %arg0, %c0_i32 : i32, i32
  }
}

</mosaic_0001>

<bundles_post_ra>
// kernel: simple_text_encoder.1
= control target key start
LH: loop header
LB: loop body
LE: loop exit
PB: predicated region body
PF: predicated region fallthrough
CT: control target
= control target key end

     0   :  { %12 = vsyncpa [#allocation3], 0  ;;  %s1050_s0 = inlined_call_operand.hbm [shape: bf16[8,64], index: 0, kind: input, shape index: {}]   ;;  %s1051_s1 = inlined_call_operand.hbm [shape: bf16[64,256], index: 1, kind: input, shape index: {}]   ;;  %s1052_s2 = inlined_call_operand.vmem [shape: f32[1,256], index: 2, kind: input, shape index: {}]   ;;  %s1053_s3 = inlined_call_operand.hbm [shape: bf16[256,256], index: 3, kind: input, shape index: {}]   ;;  %s1054_s4 = inlined_call_operand.vmem [shape: f32[1,256], index: 4, kind: input, shape index: {}]   ;;  %s1055_s5 = inlined_call_operand.hbm [shape: bf16[256,128], index: 5, kind: input, shape index: {}]   ;;  %s1056_s6 = inlined_call_operand.vmem [shape: f32[1,128], index: 6, kind: input, shape index: {}]   ;;  %s1057_s7 = inlined_call_operand.hbm [shape: f32[8,128], index: 7, kind: output, shape index: {}]  }
   0x1   :  { %13 = vsyncpa [#allocation6], 0 }
   0x2   :  { %14 = vsyncpa [#allocation9], 0 }
   0x3   :  { %15 = vsyncpa [#allocation4], 0  ;;  %s925_s24 = smov [#allocation5]   ;;  %s807_s28 = scalar_lea.hbm %s1051_s1, 1024 }
   0x4   :  { %s31_s25 = sshll.u32 %s925_s24, 4  ;;  %p808_p0 = scmp.ne.s32.totalorder %s1051_s1, %s807_s28  ;;  %s32_s25 = int_to_ptr.vmem [resolvable:$true] %s31_s25 }
   0x5   :  { %p811_p1 = scmp.lt.u32.totalorder %s807_s28, %s1051_s1 }
   0x7   :  { %p813_p2 = pnand %p811_p1, %p808_p0 }
   0x9   :  { %816 = shalt.err (!%p813_p2)
}
   0xa   :  { %s817_s10 = scalar_lea.vmem %s32_s25, 1024  ;;  %p822_p4 = scmp.lt.s32.totalorder %s32_s25, %s32_s25 }
   0xb   :  { %p818_p3 = scmp.ne.s32.totalorder %s32_s25, %s817_s10  ;;  %p823_p5 = scmp.lt.s32.totalorder %s817_s10, %s817_s10 }
   0xd   :  { %p824_p6 = por %p823_p5, %p822_p4 }
   0xf   :  { %p825_p7 = pnand %p824_p6, %p818_p3 }
  0x11   :  { %828 = shalt.err (!%p825_p7)
}
  0x12   :  { %s926_s11 = smov 128   ;;  %s927_s12 = smov 8  }
  0x13   :  { %37 = dma.hbm_to_vmem [thread:$0]  %s1051_s1, 1024, %s32_s25, [#allocation6], %s926_s11, %s926_s11, %s927_s12  }
  0x14   :  { %s928_s15 = smov [#allocation2]   ;;  %s929_s17 = smov [#allocation7]  }
  0x15   :  { %s22_s16 = sshll.u32 %s928_s15, 4  ;;  %s45_s18 = sshll.u32 %s929_s17, 4  ;;  %s23_s16 = int_to_ptr.vmem [resolvable:$true] %s22_s16  ;;  %s46_s18 = int_to_ptr.vmem [resolvable:$true] %s45_s18 }
  0x16   :  { %s829_s21 = scalar_lea.hbm %s1050_s0, 64 }
  0x17   :  { %p830_p8 = scmp.ne.s32.totalorder %s1050_s0, %s829_s21  ;;  %p833_p9 = scmp.lt.u32.totalorder %s829_s21, %s1050_s0 }
  0x19   :  { %p835_p10 = pnand %p833_p9, %p830_p8 }
  0x1b   :  { %838 = shalt.err (!%p835_p10)
}
  0x1c   :  { %s839_s1 = scalar_lea.vmem %s23_s16, 64  ;;  %p844_p12 = scmp.lt.s32.totalorder %s23_s16, %s23_s16 }
  0x1d   :  { %p840_p11 = scmp.ne.s32.totalorder %s23_s16, %s839_s1  ;;  %p845_p13 = scmp.lt.s32.totalorder %s839_s1, %s839_s1 }
  0x1f   :  { %p846_p0 = por %p845_p13, %p844_p12 }
  0x21   :  { %p847_p1 = pnand %p846_p0, %p840_p11 }
  0x23   :  { %850 = shalt.err (!%p847_p1)
}
  0x24   :  { %25 = dma.hbm_to_vmem [thread:$0]  %s1050_s0, 64, %s23_s16, [#allocation3]  }
  0x25   :  { %s851_s30 = scalar_lea.hbm %s1053_s3, 4096 }
  0x26   :  { %p852_p2 = scmp.ne.s32.totalorder %s1053_s3, %s851_s30  ;;  %p855_p3 = scmp.lt.u32.totalorder %s851_s30, %s1053_s3 }
  0x28   :  { %p857_p4 = pnand %p855_p3, %p852_p2 }
  0x2a   :  { %860 = shalt.err (!%p857_p4)
}
  0x2b   :  { %s861_s14 = scalar_lea.vmem %s46_s18, 4096  ;;  %p866_p6 = scmp.lt.s32.totalorder %s46_s18, %s46_s18 }
  0x2c   :  { %p862_p5 = scmp.ne.s32.totalorder %s46_s18, %s861_s14  ;;  %p867_p7 = scmp.lt.s32.totalorder %s861_s14, %s861_s14 }
  0x2e   :  { %p868_p8 = por %p867_p7, %p866_p6 }
  0x30   :  { %p869_p9 = pnand %p868_p8, %p862_p5 }
  0x32   :  { %872 = shalt.err (!%p869_p9)
}
  0x33   :  { %51 = dma.hbm_to_vmem [thread:$0]  %s1053_s3, 4096, %s46_s18, [#allocation6], %s926_s11, %s926_s11, %s927_s12  }
  0x34   :  { %s930_s16 = smov [#allocation8]   ;;  %s873_s21 = scalar_lea.hbm %s1055_s5, 2048 }
  0x35   :  { %s59_s17 = sshll.u32 %s930_s16, 4  ;;  %p874_p10 = scmp.ne.s32.totalorder %s1055_s5, %s873_s21  ;;  %s60_s17 = int_to_ptr.vmem [resolvable:$true] %s59_s17 }
  0x36   :  { %p877_p11 = scmp.lt.u32.totalorder %s873_s21, %s1055_s5 }
  0x38   :  { %p879_p12 = pnand %p877_p11, %p874_p10 }
  0x3a   :  { %882 = shalt.err (!%p879_p12)
}
  0x3b   :  { %s883_s1 = scalar_lea.vmem %s60_s17, 2048  ;;  %p888_p0 = scmp.lt.s32.totalorder %s60_s17, %s60_s17 }
  0x3c   :  { %p884_p13 = scmp.ne.s32.totalorder %s60_s17, %s883_s1  ;;  %p889_p1 = scmp.lt.s32.totalorder %s883_s1, %s883_s1 }
  0x3e   :  { %p890_p2 = por %p889_p1, %p888_p0 }
  0x40   :  { %p891_p3 = pnand %p890_p2, %p884_p13 }
  0x42   :  { %894 = shalt.err (!%p891_p3)
}
  0x43   :  { %s931_s3 = smov 64   ;;  %s932_s11 = smov 4  }
  0x44   :  { %65 = dma.hbm_to_vmem [thread:$0]  %s1055_s5, 2048, %s60_s17, [#allocation9], %s931_s3, %s931_s3, %s932_s11  }
  0x45   :  { %917 = dma.done.wait [#allocation3], 64  }
  0x46   :  { %918 = vsyncadd [#allocation3], 4294967232 }
  0x47   :  { %919 = dma.done.wait [#allocation6], 5120  }
  0x48   :  { %920 = vsyncadd [#allocation6], 4294962176 }
  0x49   :  { %921 = dma.done.wait [#allocation9], 2048  }
  0x4a   :  { %922 = vsyncadd [#allocation9], 4294965248  ;;  %v933_v0 = vmov 0   ;;  %v729_v1 = vld [vmem:[#allocation5 + $0x4] ss:$8 sps:$4 sm:$0xff]   ;;  %vm142_vm0 = vcmask 523264   ;;  %v92_v54 = vlaneseq }
  0x4b   :  { %178 = vmatprep.mubr.bf16.mxu0 %v933_v0  ;;  %v731_v2 = vld [vmem:[#allocation5] ss:$8 sps:$4 sm:$0xff]   ;;  %146 = vmatprep.subr.bf16.mxu0 %v729_v1  ;;  %v732_v3 = vld [vmem:[#allocation5 + $0x14] ss:$8 sps:$4 sm:$0xff]   ;;  %v734_v4 = vld [vmem:[#allocation5 + $0x10] ss:$8 sps:$4 sm:$0xff]  }
  0x4c   :  { %147 = vmatpush1.bf16.msra.mxu0 %v731_v2  ;;  %v735_v5 = vld [vmem:[#allocation5 + $0x24] ss:$8 sps:$4 sm:$0xff]   ;;  %v737_v6 = vld [vmem:[#allocation5 + $0x20] ss:$8 sps:$4 sm:$0xff]   ;;  %v744_v9 = vld [vmem:[#allocation7 + $0x14] ss:$8 sps:$4 sm:$0xff]  }
  0x4d   :  { %148 = vmatprep.subr.bf16.mxu0 %v732_v3  ;;  %v741_v7 = vld [vmem:[#allocation7 + $0x4] ss:$8 sps:$4 sm:$0xff]   ;;  %v743_v8 = vld [vmem:[#allocation7] ss:$8 sps:$4 sm:$0xff]   ;;  %v738_v10 = vld [vmem:[#allocation5 + $0x34] ss:$8 sps:$4 sm:$0xff]  }
  0x4e   :  { %395 = vmatprep.subr.bf16.mxu1 %v741_v7  ;;  %v746_v11 = vld [vmem:[#allocation7 + $0x10] ss:$8 sps:$4 sm:$0xff]   ;;  %v747_v12 = vld [vmem:[#allocation7 + $0x24] ss:$8 sps:$4 sm:$0xff]   ;;  %v749_v14 = vld [vmem:[#allocation7 + $0x20] ss:$8 sps:$4 sm:$0xff]  }
  0x4f   :  { %396 = vmatpush1.bf16.msra.mxu1 %v743_v8  ;;  %v740_v13 = vld [vmem:[#allocation5 + $0x30] ss:$8 sps:$4 sm:$0xff]   ;;  %v750_v15 = vld [vmem:[#allocation7 + $0x34] ss:$8 sps:$4 sm:$0xff]   ;;  %v753_v18 = vld [vmem:[#allocation7 + $0x44] ss:$8 sps:$4 sm:$0xff]  }
  0x50   :  { %149 = vmatpush1.bf16.msra.mxu0 %v734_v4  ;;  %397 = vmatprep.subr.bf16.mxu1 %v744_v9  ;;  %v81_v16 = vld [vmem:[#allocation2] sm:$0xf]  ;;  %v752_v17 = vld [vmem:[#allocation7 + $0x30] ss:$8 sps:$4 sm:$0xff]   ;;  %v755_v19 = vld [vmem:[#allocation7 + $0x40] ss:$8 sps:$4 sm:$0xff]  }
  0x51   :  { %150 = vmatprep.subr.bf16.mxu0 %v735_v5  ;;  %v756_v20 = vld [vmem:[#allocation7 + $0x54] ss:$8 sps:$4 sm:$0xff]   ;;  %v758_v21 = vld [vmem:[#allocation7 + $0x50] ss:$8 sps:$4 sm:$0xff]   ;;  %v759_v22 = vld [vmem:[#allocation7 + $0x64] ss:$8 sps:$4 sm:$0xff]  }
  0x52   :  { %v761_v23 = vld [vmem:[#allocation7 + $0x60] ss:$8 sps:$4 sm:$0xff]   ;;  %v762_v24 = vld [vmem:[#allocation7 + $0x74] ss:$8 sps:$4 sm:$0xff]   ;;  %v764_v25 = vld [vmem:[#allocation7 + $0x70] ss:$8 sps:$4 sm:$0xff]  }
  0x53   :  { %398 = vmatpush1.bf16.msra.mxu1 %v746_v11  ;;  %v765_v26 = vld [vmem:[#allocation7 + $0x84] ss:$8 sps:$4 sm:$0xff]   ;;  %v767_v27 = vld [vmem:[#allocation7 + $0x80] ss:$8 sps:$4 sm:$0xff]   ;;  %v768_v28 = vld [vmem:[#allocation7 + $0x94] ss:$8 sps:$4 sm:$0xff]  }
  0x54   :  { %151 = vmatpush1.bf16.msra.mxu0 %v737_v6  ;;  %399 = vmatprep.subr.bf16.mxu1 %v747_v12  ;;  %v770_v29 = vld [vmem:[#allocation7 + $0x90] ss:$8 sps:$4 sm:$0xff]   ;;  %v771_v30 = vld [vmem:[#allocation7 + $0xa4] ss:$8 sps:$4 sm:$0xff]   ;;  %v773_v31 = vld [vmem:[#allocation7 + $0xa0] ss:$8 sps:$4 sm:$0xff]  }
  0x55   :  { %152 = vmatprep.subr.bf16.mxu0 %v738_v10  ;;  %v774_v32 = vld [vmem:[#allocation7 + $0xb4] ss:$8 sps:$4 sm:$0xff]   ;;  %v776_v33 = vld [vmem:[#allocation7 + $0xb0] ss:$8 sps:$4 sm:$0xff]   ;;  %v777_v34 = vld [vmem:[#allocation7 + $0xc4] ss:$8 sps:$4 sm:$0xff]  }
  0x56   :  { %v779_v35 = vld [vmem:[#allocation7 + $0xc0] ss:$8 sps:$4 sm:$0xff]   ;;  %v780_v36 = vld [vmem:[#allocation7 + $0xd4] ss:$8 sps:$4 sm:$0xff]   ;;  %v782_v37 = vld [vmem:[#allocation7 + $0xd0] ss:$8 sps:$4 sm:$0xff]  }
  0x57   :  { %400 = vmatpush1.bf16.msra.mxu1 %v749_v14  ;;  %v783_v38 = vld [vmem:[#allocation7 + $0xe4] ss:$8 sps:$4 sm:$0xff]   ;;  %v785_v39 = vld [vmem:[#allocation7 + $0xe0] ss:$8 sps:$4 sm:$0xff]   ;;  %v786_v40 = vld [vmem:[#allocation7 + $0xf4] ss:$8 sps:$4 sm:$0xff]  }
  0x58   :  { %153 = vmatpush1.bf16.msra.mxu0 %v740_v13  ;;  %401 = vmatprep.subr.bf16.mxu1 %v750_v15  ;;  %v788_v41 = vld [vmem:[#allocation7 + $0xf0] ss:$8 sps:$4 sm:$0xff]   ;;  %v789_v42 = vld [vmem:[#allocation8 + $0x40] sm:$0xff]   ;;  %v791_v44 = vld [vmem:[#allocation8 + $0x48] sm:$0xff]   ;;  %v93_v55 = vshrl.u32 %v92_v54, 7 }
  0x59   :  { %v790_v43 = vld [vmem:[#allocation8] sm:$0xff]   ;;  %697 = vmatprep.subr.bf16.mxu0 %v789_v42  ;;  %v792_v45 = vld [vmem:[#allocation8 + $0x8] sm:$0xff]   ;;  %v793_v46 = vld [vmem:[#allocation8 + $0x50] sm:$0xff]  }
  0x5a   :  { %v794_v47 = vld [vmem:[#allocation8 + $0x10] sm:$0xff]   ;;  %v795_v48 = vld [vmem:[#allocation8 + $0x58] sm:$0xff]   ;;  %v797_v50 = vld [vmem:[#allocation8 + $0x60] sm:$0xff]   ;;  %v94_v56 = vsub.s32 0, %v93_v55  ;;  %v98_v58 = vsub.s32 1, %v93_v55 }
  0x5b   :  { %647 = vmatmul.mubr.msk.bf16.vlgmr.msra.gmra.mrb[0].mxu0 %vm142_vm0, %v81_v16  ;;  %402 = vmatpush1.bf16.msra.mxu1 %v752_v17  ;;  %v796_v49 = vld [vmem:[#allocation8 + $0x18] sm:$0xff]   ;;  %v798_v51 = vld [vmem:[#allocation8 + $0x20] sm:$0xff]   ;;  %v799_v52 = vld [vmem:[#allocation8 + $0x68] sm:$0xff]  }
  0x5c   :  { %403 = vmatprep.subr.bf16.mxu1 %v753_v18  ;;  %698 = vmatpush3.bf16.msra.mxu0 %v790_v43  ;;  %v800_v53 = vld [vmem:[#allocation8 + $0x28] sm:$0xff]   ;;  %v90_v57 = vld [vmem:[%s1052_s2] sm:$0x3]  ;;  %v801_v7 = vld [vmem:[#allocation8 + $0x70] sm:$0xff]  }
  0x5d   :  { %699 = vmatprep.subr.bf16.mxu0 %v791_v44  ;;  %v95_v59 = vrot.slane %v90_v57, %v94_v56  ;;  %v99_v60 = vrot.slane %v90_v57, %v98_v58  ;;  %v802_v8 = vld [vmem:[#allocation8 + $0x30] sm:$0xff]   ;;  %v803_v9 = vld [vmem:[#allocation8 + $0x78] sm:$0xff]  }
  0x5e   :  { %v804_v10 = vld [vmem:[#allocation8 + $0x38] sm:$0xff]  }
  0x5f   :  { %404 = vmatpush1.bf16.msra.mxu1 %v755_v19  ;;  %v223_v11 = vld [vmem:[%s1054_s4] sm:$0x3]  ;;  %s934_s4 = smov [#allocation10]  }
  0x60   :  { %405 = vmatprep.subr.bf16.mxu1 %v756_v20  ;;  %700 = vmatpush3.bf16.msra.mxu0 %v792_v45  ;;  %v228_v12 = vrot.slane %v223_v11, %v94_v56  ;;  %v232_v13 = vrot.slane %v223_v11, %v98_v58  ;;  %s628_s30 = sshll.u32 %s934_s4, 4  ;;  %s629_s30 = int_to_ptr.vmem [resolvable:$true] %s628_s30 }
  0x61   :  { %701 = vmatprep.subr.bf16.mxu0 %v793_v46  ;;  %s895_s8 = scalar_lea.vmem %s629_s30, 128  ;;  %p900_p5 = scmp.lt.s32.totalorder %s629_s30, %s629_s30 }
  0x62   :  { %p896_p4 = scmp.ne.s32.totalorder %s629_s30, %s895_s8  ;;  %p901_p6 = scmp.lt.s32.totalorder %s895_s8, %s895_s8 }
  0x63   :  { %406 = vmatpush1.bf16.msra.mxu1 %v758_v21 }
  0x64   :  { %407 = vmatprep.subr.bf16.mxu1 %v759_v22  ;;  %702 = vmatpush3.bf16.msra.mxu0 %v794_v47  ;;  %p902_p7 = por %p901_p6, %p900_p5 }
  0x65   :  { %703 = vmatprep.subr.bf16.mxu0 %v795_v48 }
  0x66   :  { %p903_p8 = pnand %p902_p7, %p896_p4 }
  0x67   :  { %408 = vmatpush1.bf16.msra.mxu1 %v761_v23 }
  0x68   :  { %409 = vmatprep.subr.bf16.mxu1 %v762_v24  ;;  %704 = vmatpush3.bf16.msra.mxu0 %v796_v49 }
  0x69   :  { %705 = vmatprep.subr.bf16.mxu0 %v797_v50 }
  0x6b   :  { %410 = vmatpush1.bf16.msra.mxu1 %v764_v25 }
  0x6c   :  { %411 = vmatprep.subr.bf16.mxu1 %v765_v26  ;;  %706 = vmatpush3.bf16.msra.mxu0 %v798_v51  ;;  %v680_v26 = vld [vmem:[%s1056_s6] ss:$0 sm:$0xff] }
  0x6d   :  { %707 = vmatprep.subr.bf16.mxu0 %v799_v52 }
  0x6f   :  { %412 = vmatpush1.bf16.msra.mxu1 %v767_v27 }
  0x70   :  { %413 = vmatprep.subr.bf16.mxu1 %v768_v28  ;;  %708 = vmatpush3.bf16.msra.mxu0 %v800_v53 }
  0x71   :  { %709 = vmatprep.subr.bf16.mxu0 %v801_v7 }
  0x73   :  { %414 = vmatpush1.bf16.msra.mxu1 %v770_v29 }
  0x74   :  { %415 = vmatprep.subr.bf16.mxu1 %v771_v30  ;;  %710 = vmatpush3.bf16.msra.mxu0 %v802_v8 }
  0x75   :  { %711 = vmatprep.subr.bf16.mxu0 %v803_v9 }
  0x77   :  { %416 = vmatpush1.bf16.msra.mxu1 %v773_v31 }
  0x78   :  { %417 = vmatprep.subr.bf16.mxu1 %v774_v32  ;;  %712 = vmatpush3.bf16.msra.mxu0 %v804_v10 }
  0x7b   :  { %418 = vmatpush1.bf16.msra.mxu1 %v776_v33 }
  0x7c   :  { %419 = vmatprep.subr.bf16.mxu1 %v777_v34 }
  0x7f   :  { %420 = vmatpush1.bf16.msra.mxu1 %v779_v35 }
  0x80   :  { %421 = vmatprep.subr.bf16.mxu1 %v780_v36 }
  0x83   :  { %422 = vmatpush1.bf16.msra.mxu1 %v782_v37 }
  0x84   :  { %423 = vmatprep.subr.bf16.mxu1 %v783_v38 }
  0x87   :  { %424 = vmatpush1.bf16.msra.mxu1 %v785_v39 }
  0x88   :  { %425 = vmatprep.subr.bf16.mxu1 %v786_v40 }
  0x8b   :  { %426 = vmatpush1.bf16.msra.mxu1 %v788_v41 }
 0x12e   :  { %v180_v61 = vpop.f32.mrb[0].mxu0 }
 0x12f   :  { %v181_v62 = vadd.f32 %v180_v61, %v95_v59  ;;  %v182_v63 = vpop.f32.mrb[1].mxu0 }
 0x130   :  { %v183_v0 = vadd.f32 %v182_v63, %v99_v60  ;;  %v184_v1 = vpop.f32.mrb[2].mxu0 }
 0x131   :  { %v187_v2 = vmax.f32 %v181_v62, 0.0  ;;  %v185_v3 = vpop.f32.mrb[3].mxu0 }
 0x132   :  { %v188_v4 = vmax.f32 %v183_v0, 0.0 }
 0x133   :  { %v189_v6 = vpack.c.bf16 %v187_v2, %v187_v2 }
 0x134   :  { %v190_v5 = vpack.c.bf16 %v188_v4, %v188_v4 }
 0x136   :  { %427 = vmatprep.mubr.bf16.mxu1 %v190_v5 }
 0x137   :  { %428 = vmatmul.mubr.bf16.vlgmr.msra.gmra.mrb[0].mxu1 %v189_v6 }
 0x20a   :  { %v429_v14 = vpop.f32.mrb[0].mxu1 }
 0x20b   :  { %v430_v15 = vadd.f32 %v429_v14, %v228_v12  ;;  %v431_v16 = vpop.f32.mrb[1].mxu1 }
 0x20c   :  { %v432_v17 = vadd.f32 %v431_v16, %v232_v13  ;;  %v433_v18 = vpop.f32.mrb[2].mxu1 }
 0x20d   :  { %v436_v19 = vmax.f32 %v430_v15, 0.0  ;;  %v434_v20 = vpop.f32.mrb[3].mxu1 }
 0x20e   :  { %v437_v21 = vmax.f32 %v432_v17, 0.0 }
 0x20f   :  { %v438_v23 = vpack.c.bf16 %v436_v19, %v436_v19 }
 0x210   :  { %v439_v22 = vpack.c.bf16 %v437_v21, %v437_v21 }
 0x212   :  { %607 = vmatprep.mubr.bf16.mxu0 %v439_v22 }
 0x213   :  { %608 = vmatmul.mubr.bf16.vlgmr.msra.gmra.mrb[4].mxu0 %v438_v23 }
 0x2e6   :  { %v713_v24 = vpop.f32.mrb[4].mxu0 }
 0x2e7   :  { %v714_v25 = vpop.f32.mrb[5].mxu0 }
 0x2e8   :  { %v715_v27 = vadd.f32 %v714_v25, %v713_v24  ;;  %v716_v28 = vpop.f32.mrb[6].mxu0 }
 0x2e9   :  { %v717_v29 = vpop.f32.mrb[7].mxu0 }
 0x2ea   :  { %v610_v30 = vadd.f32 %v715_v27, %v680_v26 }
 0x2ec   :  { %v615_v31 = vmul.f32 %v610_v30, %v610_v30 }
 0x2ee   :  { %616 = vadd.xlane.f32.xlu0 %v615_v31 }
 0x37b   :  { %v617_v32 = vpop.xlane.xlu0 %616 }
 0x37c   :  { %v618_v33 = vmax.f32 %v617_v32, 1e-24 }
 0x37e   :  { %805 = vrsqrt.f32 %v618_v33 }
 0x388   :  { %v806_v34 = vpop.eup %805 }
 0x389   :  { %v620_v35 = vmul.f32 %v806_v34, %v610_v30 }
 0x38b   :  { %621 = vst [vmem:[#allocation10] sm:$0xff] %v620_v35 }
 0x38c   :  { %906 = shalt.err (!%p903_p8)
}
 0x38d   :  { %s907_s10 = scalar_lea.hbm %s1057_s7, 128 }
 0x38e   :  { %p908_p9 = scmp.ne.s32.totalorder %s1057_s7, %s907_s10  ;;  %p911_p10 = scmp.lt.u32.totalorder %s907_s10, %s1057_s7 }
 0x390   :  { %p913_p11 = pnand %p911_p10, %p908_p9 }
 0x392   :  { %916 = shalt.err (!%p913_p11)
}
 0x393   :  { %631 = dma.vmem_to_hbm [thread:$0]  %s629_s30, 128, %s1057_s7, [#allocation4]  }
 0x394   :  { %923 = dma.done.wait [#allocation4], 128  }
 0x395   :  { %924 = vsyncadd [#allocation4], 4294967168 }
 0x396   :  { %635 = vsyncpa [#allocation3], 1 }
 0x397   :  { %636 = vsyncpa [#allocation6], 1 }
 0x398   :  { %637 = vsyncpa [#allocation9], 1 }
 0x399   :  { %638 = vsyncpa [#allocation4], 1 }

</bundles_post_ra>
